<compile_context>
chip_gen: v7x
topology: tpu7x:2x2x1
jax: 0.10.0
libtpu: 0.0.40
codegen_flags: <defaults>
</compile_context>

<pallas_src>
import functools

import jax
import jax.numpy as jnp
from jax import lax
from jax.experimental import pallas as pl
from jax.experimental.pallas import tpu as pltpu


def _layernorm_f32(h, w, b, eps):
    mu = jnp.mean(h, axis=-1, keepdims=True)
    var = jnp.mean((h - mu) ** 2, axis=-1, keepdims=True)
    return (h - mu) * lax.rsqrt(var + eps) * w + b


def _vmem_limit_bytes():
    # v7x has only 64 MiB VMEM per TensorCore; leave headroom for compiler
    # scratch and double buffers. v5e/v6e (128 MiB) get a higher cap.
    cap = 64 * 1024 * 1024
    try:
        cap = getattr(pltpu.get_tpu_info(), "vmem_capacity_bytes", cap)
    except Exception:
        pass
    return min(int(cap * 3 // 4), 96 * 1024 * 1024)


# --------------------------------------------------------------------------
# Kernel A: fused LayerNorm1 + QKV projection (one (C, 3C) bf16 MXU matmul),
# emitting q/k/v directly in head-major (B, H, T, hs) layout.
# The 1/sqrt(hs) attention scale is pre-folded into the wq columns (wrapper).
# Grid: (B, T // tq).
# --------------------------------------------------------------------------
def _qkv_kernel(x_ref, ln1w_ref, ln1b_ref, wqkv_ref, q_ref, k_ref, v_ref,
                *, n_heads, head_size, eps=1e-5):
    C = n_heads * head_size
    x = x_ref[0]                                             # (tq, C) f32
    h1 = _layernorm_f32(x, ln1w_ref[0], ln1b_ref[0], eps)
    qkv = jnp.dot(h1.astype(jnp.bfloat16), wqkv_ref[...],
                  preferred_element_type=jnp.float32)        # (tq, 3C) f32 acc
    qkv = qkv.astype(q_ref.dtype)                            # bf16
    # Per-head lane slices -> head-major stores (static offsets, unrolled).
    for h in range(n_heads):
        lo = h * head_size
        q_ref[0, h] = qkv[:, lo:lo + head_size]
        k_ref[0, h] = qkv[:, C + lo:C + lo + head_size]
        v_ref[0, h] = qkv[:, 2 * C + lo:2 * C + lo + head_size]


# --------------------------------------------------------------------------
# Kernel B: flash-style causal attention (heads batched, mask only on the
# diagonal tile) + output projection + residual + LayerNorm2 + FeedForward
# + residual.  Grid: (B, T // tq); KV tiles via in-kernel online softmax.
# --------------------------------------------------------------------------
def _attn_ffn_kernel(x_ref, q_ref, k_ref, v_ref, wproj_ref, bproj_ref,
                     ln2w_ref, ln2b_ref, w1_ref, b1_ref, w2_ref, b2_ref,
                     o_ref, *, tq, tk, n_heads, head_size, eps=1e-5):
    qi = pl.program_id(1)
    q_start = qi * tq

    x = x_ref[0]                                    # (tq, C)     f32
    q = q_ref[0]                                    # (H, tq, hs) bf16 (pre-scaled)

    m0 = jnp.full((n_heads, tq, 1), -1e30, jnp.float32)
    l0 = jnp.zeros((n_heads, tq, 1), jnp.float32)
    acc0 = jnp.zeros((n_heads, tq, head_size), jnp.float32)

    def kv_step(kv_idx, carry, masked):
        m, l, acc = carry
        kv_start = pl.multiple_of(kv_idx * tk, tk)
        kt = k_ref[0, :, pl.ds(kv_start, tk), :]    # (H, tk, hs) bf16
        vt = v_ref[0, :, pl.ds(kv_start, tk), :]    # (H, tk, hs) bf16

        # Batched over heads (leading batch dim), contract hs. Scale already
        # folded into q via the wq weight.
        s = lax.dot_general(q, kt, (((2,), (2,)), ((0,), (0,))),
                            preferred_element_type=jnp.float32)      # (H,tq,tk)
        if masked:  # only the diagonal tile needs the causal mask
            row = q_start + lax.broadcasted_iota(jnp.int32, (tq, tk), 0)
            col = kv_start + lax.broadcasted_iota(jnp.int32, (tq, tk), 1)
            s = jnp.where((col <= row)[None, :, :], s, -1e30)

        m_new = jnp.maximum(m, jnp.max(s, axis=-1, keepdims=True))
        alpha = jnp.exp(m - m_new)
        p = jnp.exp(s - m_new)                                        # f32
        l_new = alpha * l + jnp.sum(p, axis=-1, keepdims=True)
        pv = lax.dot_general(p.astype(jnp.bfloat16), vt,
                             (((2,), (1,)), ((0,), (0,))),
                             preferred_element_type=jnp.float32)      # (H,tq,hs)
        return m_new, l_new, alpha * acc + pv

    # Off-diagonal KV tiles: fully unmasked fast path (no iota/compare/select);
    # tiles above the diagonal are skipped entirely by the loop bound.
    carry = lax.fori_loop(0, qi, lambda i, c: kv_step(i, c, False),
                          (m0, l0, acc0))
    # Diagonal tile: causal mask applied only here.
    m, l, acc = kv_step(qi, carry, True)

    acc = acc * pl.reciprocal(l, approx=True)        # (H, tq, hs) f32
    acc = acc.astype(jnp.bfloat16)

    # Head concat -> (tq, C), then ONE full-depth (tq,C)x(C,C) MXU matmul.
    ctx = jnp.concatenate([acc[h] for h in range(n_heads)], axis=-1)  # (tq, C)
    attn = jnp.dot(ctx, wproj_ref[...],
                   preferred_element_type=jnp.float32) + bproj_ref[0]

    x1 = x + attn

    # Feed-forward (pre-LN), bf16 MXU operands, f32 everything else.
    h2 = _layernorm_f32(x1, ln2w_ref[0], ln2b_ref[0], eps)
    ff = jnp.dot(h2.astype(jnp.bfloat16), w1_ref[...],
                 preferred_element_type=jnp.float32) + b1_ref[0]
    ff = jnp.maximum(ff, 0.0)
    ff = jnp.dot(ff.astype(jnp.bfloat16), w2_ref[...],
                 preferred_element_type=jnp.float32) + b2_ref[0]

    o_ref[0] = (x1 + ff).astype(o_ref.dtype)


# --------------------------------------------------------------------------
# Wrapper
# --------------------------------------------------------------------------
def transformer_block(x, params, n_heads, *, tq=None):
    """x: (B, T, C) float32; params: dict of weights (see init_params)."""
    B, T, C = x.shape
    hs = C // n_heads
    hidden = 4 * C
    if tq is None:
        # TODO(synk): raise to 256 on v6e/v7x once KV streaming / weight
        # single-buffering frees the VMEM budget; 128 matches the v5e MXU.
        tq = min(T, 128)
    assert T % tq == 0, "T must be a multiple of the q-tile size"
    tk = tq
    n_qt = T // tq

    bf16 = jnp.bfloat16
    # Fused QKV weight with the softmax scale folded into the wq columns.
    scale = 1.0 / (hs ** 0.5)
    wqkv = jnp.concatenate([params["wq"] * scale, params["wk"], params["wv"]],
                           axis=1).astype(bf16)                  # (C, 3C)
    wproj = params["wproj"].astype(bf16)                         # (C, C)
    w1 = params["w1"].astype(bf16)
    w2 = params["w2"].astype(bf16)

    def full(shape):
        return pl.BlockSpec(shape, lambda b, t: (0,) * len(shape))

    # TODO(synk): on v7x megacore, pair q-tiles (t, n_qt-1-t) or shard the
    # batch axis to balance the causal workload across the two TensorCores.
    cparams = pltpu.CompilerParams(
        dimension_semantics=("parallel", "parallel"),
        vmem_limit_bytes=_vmem_limit_bytes())

    # ---- Kernel A: LN1 + fused QKV -> head-major q/k/v (B, H, T, hs) bf16 ----
    qkv_kernel = functools.partial(_qkv_kernel, n_heads=n_heads, head_size=hs)
    hm_shape = jax.ShapeDtypeStruct((B, n_heads, T, hs), bf16)
    hm_spec = pl.BlockSpec((1, n_heads, tq, hs), lambda b, t: (b, 0, t, 0))
    q, k, v = pl.pallas_call(
        qkv_kernel,
        out_shape=(hm_shape, hm_shape, hm_shape),
        grid_spec=pltpu.PrefetchScalarGridSpec(
            num_scalar_prefetch=0,
            grid=(B, n_qt),
            in_specs=[
                pl.BlockSpec((1, tq, C), lambda b, t: (b, t, 0)),
                full((1, C)), full((1, C)),
                full((C, 3 * C)),
            ],
            out_specs=[hm_spec, hm_spec, hm_spec],
        ),
        compiler_params=cparams,
    )(x, params["ln1_w"], params["ln1_b"], wqkv)

    # ---- Kernel B: attention + projection + residual + LN2 + FF + residual ----
    kernel = functools.partial(_attn_ffn_kernel, tq=tq, tk=tk,
                               n_heads=n_heads, head_size=hs)
    out = pl.pallas_call(
        kernel,
        out_shape=jax.ShapeDtypeStruct((B, T, C), x.dtype),
        grid_spec=pltpu.PrefetchScalarGridSpec(
            num_scalar_prefetch=0,
            grid=(B, n_qt),
            in_specs=[
                pl.BlockSpec((1, tq, C), lambda b, t: (b, t, 0)),              # x tile
                pl.BlockSpec((1, n_heads, tq, hs), lambda b, t: (b, 0, t, 0)),   # q tile
                pl.BlockSpec((1, n_heads, T, hs), lambda b, t: (b, 0, 0, 0)),    # k (full seq)
                pl.BlockSpec((1, n_heads, T, hs), lambda b, t: (b, 0, 0, 0)),    # v (full seq)
                full((C, C)), full((1, C)),                                    # wproj, bproj
                full((1, C)), full((1, C)),                                    # ln2 w / b
                full((C, hidden)), full((1, hidden)),                          # FF w1, b1
                full((hidden, C)), full((1, C)),                               # FF w2, b2
            ],
            out_specs=pl.BlockSpec((1, tq, C), lambda b, t: (b, t, 0)),
        ),
        compiler_params=cparams,
        input_output_aliases={0: 0},   # out has identical shape/dtype to x
    )(x, q, k, v, wproj, params["bproj"],
      params["ln2_w"], params["ln2_b"],
      w1, params["b1"], w2, params["b2"])
    return out


def init_params(key, n_embed):
    C = n_embed
    hidden = 4 * C
    keys = jax.random.split(key, 8)
    s = 0.02
    return {
        "ln1_w": jnp.ones((1, C), jnp.float32),
        "ln1_b": jnp.zeros((1, C), jnp.float32),
        "wq": s * jax.random.normal(keys[0], (C, C), jnp.float32),
        "wk": s * jax.random.normal(keys[1], (C, C), jnp.float32),
        "wv": s * jax.random.normal(keys[2], (C, C), jnp.float32),
        "wproj": s * jax.random.normal(keys[3], (C, C), jnp.float32),
        "bproj": s * jax.random.normal(keys[4], (1, C), jnp.float32),
        "ln2_w": jnp.ones((1, C), jnp.float32),
        "ln2_b": jnp.zeros((1, C), jnp.float32),
        "w1": s * jax.random.normal(keys[5], (C, hidden), jnp.float32),
        "b1": jnp.zeros((1, hidden), jnp.float32),
        "w2": s * jax.random.normal(keys[6], (hidden, C), jnp.float32),
        "b2": jnp.zeros((1, C), jnp.float32),
    }


def _reference_block(x, p, n_heads, eps=1e-5):
    """Pure-JAX f32 reference for correctness checking."""
    B, T, C = x.shape
    hs = C // n_heads

    def ln(h, w, b):
        mu = jnp.mean(h, -1, keepdims=True)
        var = jnp.mean((h - mu) ** 2, -1, keepdims=True)
        return (h - mu) / jnp.sqrt(var + eps) * w[0] + b[0]

    h1 = ln(x, p["ln1_w"], p["ln1_b"])
    q = h1 @ p["wq"]
    k = h1 @ p["wk"]
    v = h1 @ p["wv"]
    q = q.reshape(B, T, n_heads, hs).transpose(0, 2, 1, 3)
    k = k.reshape(B, T, n_heads, hs).transpose(0, 2, 1, 3)
    v = v.reshape(B, T, n_heads, hs).transpose(0, 2, 1, 3)
    att = (q @ k.transpose(0, 1, 3, 2)) / (hs ** 0.5)
    mask = jnp.tril(jnp.ones((T, T), bool))
    att = jnp.where(mask, att, -1e30)
    att = jax.nn.softmax(att, -1)
    o = (att @ v).transpose(0, 2, 1, 3).reshape(B, T, C)
    x1 = x + o @ p["wproj"] + p["bproj"][0]
    h2 = ln(x1, p["ln2_w"], p["ln2_b"])
    ff = jnp.maximum(h2 @ p["w1"] + p["b1"][0], 0.0) @ p["w2"] + p["b2"][0]
    return x1 + ff


if __name__ == "__main__":
    B, T, C, n_heads = 2, 8, 32, 4        # batch, seq (block_size), n_embed
    key = jax.random.PRNGKey(0)
    kx, kp = jax.random.split(key)
    x = jax.random.normal(kx, (B, T, C), jnp.float32)
    params = init_params(kp, C)

    out = transformer_block(x, params, n_heads)
    out = jax.block_until_ready(out)

    ref = _reference_block(x, params, n_heads)
    assert out.shape == (B, T, C)
    # bf16 MXU operands with f32 accumulation -> small drift vs. f32 reference.
    assert jnp.allclose(out, ref, atol=1e-2, rtol=1e-2), "mismatch vs reference"
    print("KERNEL_OK")
</pallas_src>

<mosaic_0001>
module attributes {stable_mosaic.version = 11 : i64} {
  func.func @_qkv_kernel(%arg0: i32, %arg1: i32, %arg2: memref<1x8x32xf32, #tpu.memory_space<vmem>>, %arg3: memref<1x32xf32, #tpu.memory_space<vmem>>, %arg4: memref<1x32xf32, #tpu.memory_space<vmem>>, %arg5: memref<32x96xbf16, #tpu.memory_space<vmem>>, %arg6: memref<1x4x8x8xbf16, #tpu.memory_space<vmem>>, %arg7: memref<1x4x8x8xbf16, #tpu.memory_space<vmem>>, %arg8: memref<1x4x8x8xbf16, #tpu.memory_space<vmem>>) attributes {dimension_semantics = [#tpu.dimension_semantics<parallel>, #tpu.dimension_semantics<parallel>], iteration_bounds = array<i64: 2, 1>, scalar_prefetch = 0 : i64, scratch_operands = 0 : i64, tpu.core_type = #tpu.core_type<tc>, window_params = [{transform_indices = @transform_0, window_bounds = array<i64: 1, 8, 32>}, {pipeline_mode = #tpu.pipeline_mode<synchronous>, transform_indices = @transform_1, window_bounds = array<i64: 1, 32>}, {pipeline_mode = #tpu.pipeline_mode<synchronous>, transform_indices = @transform_2, window_bounds = array<i64: 1, 32>}, {pipeline_mode = #tpu.pipeline_mode<synchronous>, transform_indices = @transform_3, window_bounds = array<i64: 32, 96>}, {transform_indices = @transform_4, window_bounds = array<i64: 1, 4, 8, 8>}, {transform_indices = @transform_5, window_bounds = array<i64: 1, 4, 8, 8>}, {transform_indices = @transform_6, window_bounds = array<i64: 1, 4, 8, 8>}]} {
    %c0 = arith.constant 0 : index
    %c0_0 = arith.constant 0 : index
    %c0_1 = arith.constant 0 : index
    %0 = vector.load %arg2[%c0, %c0_0, %c0_1] : memref<1x8x32xf32, #tpu.memory_space<vmem>>, vector<1x8x32xf32>
    %1 = vector.shape_cast %0 : vector<1x8x32xf32> to vector<8x32xf32>
    %c0_2 = arith.constant 0 : index
    %c0_3 = arith.constant 0 : index
    %2 = vector.load %arg3[%c0_2, %c0_3] : memref<1x32xf32, #tpu.memory_space<vmem>>, vector<1x32xf32>
    %3 = vector.shape_cast %2 : vector<1x32xf32> to vector<32xf32>
    %c0_4 = arith.constant 0 : index
    %c0_5 = arith.constant 0 : index
    %4 = vector.load %arg4[%c0_4, %c0_5] : memref<1x32xf32, #tpu.memory_space<vmem>>, vector<1x32xf32>
    %5 = vector.shape_cast %4 : vector<1x32xf32> to vector<32xf32>
    %cst = arith.constant dense<0.000000e+00> : vector<8xf32>
    %6 = vector.multi_reduction <add>, %1, %cst [1] : vector<8x32xf32> to vector<8xf32>
    %7 = vector.shape_cast %6 : vector<8xf32> to vector<8x1xf32>
    %cst_6 = arith.constant 3.200000e+01 : f32
    %8 = vector.broadcast %cst_6 : f32 to vector<8x1xf32>
    %9 = arith.divf %7, %8 : vector<8x1xf32>
    %10 = vector.broadcast %9 : vector<8x1xf32> to vector<8x32xf32>
    %11 = arith.subf %1, %10 : vector<8x32xf32>
    %12 = arith.mulf %11, %11 : vector<8x32xf32>
    %cst_7 = arith.constant dense<0.000000e+00> : vector<8xf32>
    %13 = vector.multi_reduction <add>, %12, %cst_7 [1] : vector<8x32xf32> to vector<8xf32>
    %14 = vector.shape_cast %13 : vector<8xf32> to vector<8x1xf32>
    %cst_8 = arith.constant 3.200000e+01 : f32
    %15 = vector.broadcast %cst_8 : f32 to vector<8x1xf32>
    %16 = arith.divf %14, %15 : vector<8x1xf32>
    %17 = vector.broadcast %9 : vector<8x1xf32> to vector<8x32xf32>
    %18 = arith.subf %1, %17 : vector<8x32xf32>
    %cst_9 = arith.constant 9.99999974E-6 : f32
    %19 = vector.broadcast %cst_9 : f32 to vector<8x1xf32>
    %20 = arith.addf %16, %19 : vector<8x1xf32>
    %21 = math.rsqrt %20 : vector<8x1xf32>
    %22 = vector.broadcast %21 : vector<8x1xf32> to vector<8x32xf32>
    %23 = arith.mulf %18, %22 : vector<8x32xf32>
    %24 = vector.shape_cast %3 : vector<32xf32> to vector<1x32xf32>
    %25 = vector.broadcast %24 : vector<1x32xf32> to vector<8x32xf32>
    %26 = arith.mulf %23, %25 : vector<8x32xf32>
    %27 = vector.shape_cast %5 : vector<32xf32> to vector<1x32xf32>
    %28 = vector.broadcast %27 : vector<1x32xf32> to vector<8x32xf32>
    %29 = arith.addf %26, %28 : vector<8x32xf32>
    %30 = arith.truncf %29 : vector<8x32xf32> to vector<8x32xbf16>
    %c0_10 = arith.constant 0 : index
    %c0_11 = arith.constant 0 : index
    %31 = vector.load %arg5[%c0_10, %c0_11] : memref<32x96xbf16, #tpu.memory_space<vmem>>, vector<32x96xbf16>
    %cst_12 = arith.constant dense<0.000000e+00> : vector<8x96xf32>
    %32 = tpu.matmul %30, %31, %cst_12 {dimension_numbers = #tpu.dot_dimension_numbers<[1], [0], [0], [1], [0, 0, 1, 1], [], []>} : vector<8x32xbf16>, vector<32x96xbf16>, vector<8x96xf32> -> vector<8x96xf32>
    %33 = arith.truncf %32 : vector<8x96xf32> to vector<8x96xbf16>
    %34 = vector.extract_strided_slice %33 {offsets = [0, 0], sizes = [8, 8], strides = [1, 1]} : vector<8x96xbf16> to vector<8x8xbf16>
    %c0_13 = arith.constant 0 : index
    %c0_14 = arith.constant 0 : index
    %c0_15 = arith.constant 0 : index
    %c0_16 = arith.constant 0 : index
    %35 = vector.load %arg6[%c0_13, %c0_14, %c0_15, %c0_16] : memref<1x4x8x8xbf16, #tpu.memory_space<vmem>>, vector<1x1x8x8xbf16>
    %36 = vector.shape_cast %35 : vector<1x1x8x8xbf16> to vector<8x8xbf16>
    %37 = vector.shape_cast %34 : vector<8x8xbf16> to vector<1x1x8x8xbf16>
    tpu.vector_store %arg6[%c0_13, %c0_14, %c0_15, %c0_16], %37 {strides = array<i32>} : memref<1x4x8x8xbf16, #tpu.memory_space<vmem>>, vector<1x1x8x8xbf16>,
    %38 = vector.extract_strided_slice %33 {offsets = [0, 32], sizes = [8, 8], strides = [1, 1]} : vector<8x96xbf16> to vector<8x8xbf16>
    %c0_17 = arith.constant 0 : index
    %c0_18 = arith.constant 0 : index
    %c0_19 = arith.constant 0 : index
    %c0_20 = arith.constant 0 : index
    %39 = vector.load %arg7[%c0_17, %c0_18, %c0_19, %c0_20] : memref<1x4x8x8xbf16, #tpu.memory_space<vmem>>, vector<1x1x8x8xbf16>
    %40 = vector.shape_cast %39 : vector<1x1x8x8xbf16> to vector<8x8xbf16>
    %41 = vector.shape_cast %38 : vector<8x8xbf16> to vector<1x1x8x8xbf16>
    tpu.vector_store %arg7[%c0_17, %c0_18, %c0_19, %c0_20], %41 {strides = array<i32>} : memref<1x4x8x8xbf16, #tpu.memory_space<vmem>>, vector<1x1x8x8xbf16>,
    %42 = vector.extract_strided_slice %33 {offsets = [0, 64], sizes = [8, 8], strides = [1, 1]} : vector<8x96xbf16> to vector<8x8xbf16>
    %c0_21 = arith.constant 0 : index
    %c0_22 = arith.constant 0 : index
    %c0_23 = arith.constant 0 : index
    %c0_24 = arith.constant 0 : index
    %43 = vector.load %arg8[%c0_21, %c0_22, %c0_23, %c0_24] : memref<1x4x8x8xbf16, #tpu.memory_space<vmem>>, vector<1x1x8x8xbf16>
    %44 = vector.shape_cast %43 : vector<1x1x8x8xbf16> to vector<8x8xbf16>
    %45 = vector.shape_cast %42 : vector<8x8xbf16> to vector<1x1x8x8xbf16>
    tpu.vector_store %arg8[%c0_21, %c0_22, %c0_23, %c0_24], %45 {strides = array<i32>} : memref<1x4x8x8xbf16, #tpu.memory_space<vmem>>, vector<1x1x8x8xbf16>,
    %46 = vector.extract_strided_slice %33 {offsets = [0, 8], sizes = [8, 8], strides = [1, 1]} : vector<8x96xbf16> to vector<8x8xbf16>
    %c0_25 = arith.constant 0 : index
    %c1 = arith.constant 1 : index
    %c0_26 = arith.constant 0 : index
    %c0_27 = arith.constant 0 : index
    %47 = vector.load %arg6[%c0_25, %c1, %c0_26, %c0_27] : memref<1x4x8x8xbf16, #tpu.memory_space<vmem>>, vector<1x1x8x8xbf16>
    %48 = vector.shape_cast %47 : vector<1x1x8x8xbf16> to vector<8x8xbf16>
    %49 = vector.shape_cast %46 : vector<8x8xbf16> to vector<1x1x8x8xbf16>
    tpu.vector_store %arg6[%c0_25, %c1, %c0_26, %c0_27], %49 {strides = array<i32>} : memref<1x4x8x8xbf16, #tpu.memory_space<vmem>>, vector<1x1x8x8xbf16>,
    %50 = vector.extract_strided_slice %33 {offsets = [0, 40], sizes = [8, 8], strides = [1, 1]} : vector<8x96xbf16> to vector<8x8xbf16>
    %c0_28 = arith.constant 0 : index
    %c1_29 = arith.constant 1 : index
    %c0_30 = arith.constant 0 : index
    %c0_31 = arith.constant 0 : index
    %51 = vector.load %arg7[%c0_28, %c1_29, %c0_30, %c0_31] : memref<1x4x8x8xbf16, #tpu.memory_space<vmem>>, vector<1x1x8x8xbf16>
    %52 = vector.shape_cast %51 : vector<1x1x8x8xbf16> to vector<8x8xbf16>
    %53 = vector.shape_cast %50 : vector<8x8xbf16> to vector<1x1x8x8xbf16>
    tpu.vector_store %arg7[%c0_28, %c1_29, %c0_30, %c0_31], %53 {strides = array<i32>} : memref<1x4x8x8xbf16, #tpu.memory_space<vmem>>, vector<1x1x8x8xbf16>,
    %54 = vector.extract_strided_slice %33 {offsets = [0, 72], sizes = [8, 8], strides = [1, 1]} : vector<8x96xbf16> to vector<8x8xbf16>
    %c0_32 = arith.constant 0 : index
    %c1_33 = arith.constant 1 : index
    %c0_34 = arith.constant 0 : index
    %c0_35 = arith.constant 0 : index
    %55 = vector.load %arg8[%c0_32, %c1_33, %c0_34, %c0_35] : memref<1x4x8x8xbf16, #tpu.memory_space<vmem>>, vector<1x1x8x8xbf16>
    %56 = vector.shape_cast %55 : vector<1x1x8x8xbf16> to vector<8x8xbf16>
    %57 = vector.shape_cast %54 : vector<8x8xbf16> to vector<1x1x8x8xbf16>
    tpu.vector_store %arg8[%c0_32, %c1_33, %c0_34, %c0_35], %57 {strides = array<i32>} : memref<1x4x8x8xbf16, #tpu.memory_space<vmem>>, vector<1x1x8x8xbf16>,
    %58 = vector.extract_strided_slice %33 {offsets = [0, 16], sizes = [8, 8], strides = [1, 1]} : vector<8x96xbf16> to vector<8x8xbf16>
    %c0_36 = arith.constant 0 : index
    %c2 = arith.constant 2 : index
    %c0_37 = arith.constant 0 : index
    %c0_38 = arith.constant 0 : index
    %59 = vector.load %arg6[%c0_36, %c2, %c0_37, %c0_38] : memref<1x4x8x8xbf16, #tpu.memory_space<vmem>>, vector<1x1x8x8xbf16>
    %60 = vector.shape_cast %59 : vector<1x1x8x8xbf16> to vector<8x8xbf16>
    %61 = vector.shape_cast %58 : vector<8x8xbf16> to vector<1x1x8x8xbf16>
    tpu.vector_store %arg6[%c0_36, %c2, %c0_37, %c0_38], %61 {strides = array<i32>} : memref<1x4x8x8xbf16, #tpu.memory_space<vmem>>, vector<1x1x8x8xbf16>,
    %62 = vector.extract_strided_slice %33 {offsets = [0, 48], sizes = [8, 8], strides = [1, 1]} : vector<8x96xbf16> to vector<8x8xbf16>
    %c0_39 = arith.constant 0 : index
    %c2_40 = arith.constant 2 : index
    %c0_41 = arith.constant 0 : index
    %c0_42 = arith.constant 0 : index
    %63 = vector.load %arg7[%c0_39, %c2_40, %c0_41, %c0_42] : memref<1x4x8x8xbf16, #tpu.memory_space<vmem>>, vector<1x1x8x8xbf16>
    %64 = vector.shape_cast %63 : vector<1x1x8x8xbf16> to vector<8x8xbf16>
    %65 = vector.shape_cast %62 : vector<8x8xbf16> to vector<1x1x8x8xbf16>
    tpu.vector_store %arg7[%c0_39, %c2_40, %c0_41, %c0_42], %65 {strides = array<i32>} : memref<1x4x8x8xbf16, #tpu.memory_space<vmem>>, vector<1x1x8x8xbf16>,
    %66 = vector.extract_strided_slice %33 {offsets = [0, 80], sizes = [8, 8], strides = [1, 1]} : vector<8x96xbf16> to vector<8x8xbf16>
    %c0_43 = arith.constant 0 : index
    %c2_44 = arith.constant 2 : index
    %c0_45 = arith.constant 0 : index
    %c0_46 = arith.constant 0 : index
    %67 = vector.load %arg8[%c0_43, %c2_44, %c0_45, %c0_46] : memref<1x4x8x8xbf16, #tpu.memory_space<vmem>>, vector<1x1x8x8xbf16>
    %68 = vector.shape_cast %67 : vector<1x1x8x8xbf16> to vector<8x8xbf16>
    %69 = vector.shape_cast %66 : vector<8x8xbf16> to vector<1x1x8x8xbf16>
    tpu.vector_store %arg8[%c0_43, %c2_44, %c0_45, %c0_46], %69 {strides = array<i32>} : memref<1x4x8x8xbf16, #tpu.memory_space<vmem>>, vector<1x1x8x8xbf16>,
    %70 = vector.extract_strided_slice %33 {offsets = [0, 24], sizes = [8, 8], strides = [1, 1]} : vector<8x96xbf16> to vector<8x8xbf16>
    %c0_47 = arith.constant 0 : index
    %c3 = arith.constant 3 : index
    %c0_48 = arith.constant 0 : index
    %c0_49 = arith.constant 0 : index
    %71 = vector.load %arg6[%c0_47, %c3, %c0_48, %c0_49] : memref<1x4x8x8xbf16, #tpu.memory_space<vmem>>, vector<1x1x8x8xbf16>
    %72 = vector.shape_cast %71 : vector<1x1x8x8xbf16> to vector<8x8xbf16>
    %73 = vector.shape_cast %70 : vector<8x8xbf16> to vector<1x1x8x8xbf16>
    tpu.vector_store %arg6[%c0_47, %c3, %c0_48, %c0_49], %73 {strides = array<i32>} : memref<1x4x8x8xbf16, #tpu.memory_space<vmem>>, vector<1x1x8x8xbf16>,
    %74 = vector.extract_strided_slice %33 {offsets = [0, 56], sizes = [8, 8], strides = [1, 1]} : vector<8x96xbf16> to vector<8x8xbf16>
    %c0_50 = arith.constant 0 : index
    %c3_51 = arith.constant 3 : index
    %c0_52 = arith.constant 0 : index
    %c0_53 = arith.constant 0 : index
    %75 = vector.load %arg7[%c0_50, %c3_51, %c0_52, %c0_53] : memref<1x4x8x8xbf16, #tpu.memory_space<vmem>>, vector<1x1x8x8xbf16>
    %76 = vector.shape_cast %75 : vector<1x1x8x8xbf16> to vector<8x8xbf16>
    %77 = vector.shape_cast %74 : vector<8x8xbf16> to vector<1x1x8x8xbf16>
    tpu.vector_store %arg7[%c0_50, %c3_51, %c0_52, %c0_53], %77 {strides = array<i32>} : memref<1x4x8x8xbf16, #tpu.memory_space<vmem>>, vector<1x1x8x8xbf16>,
    %78 = vector.extract_strided_slice %33 {offsets = [0, 88], sizes = [8, 8], strides = [1, 1]} : vector<8x96xbf16> to vector<8x8xbf16>
    %c0_54 = arith.constant 0 : index
    %c3_55 = arith.constant 3 : index
    %c0_56 = arith.constant 0 : index
    %c0_57 = arith.constant 0 : index
    %79 = vector.load %arg8[%c0_54, %c3_55, %c0_56, %c0_57] : memref<1x4x8x8xbf16, #tpu.memory_space<vmem>>, vector<1x1x8x8xbf16>
    %80 = vector.shape_cast %79 : vector<1x1x8x8xbf16> to vector<8x8xbf16>
    %81 = vector.shape_cast %78 : vector<8x8xbf16> to vector<1x1x8x8xbf16>
    tpu.vector_store %arg8[%c0_54, %c3_55, %c0_56, %c0_57], %81 {strides = array<i32>} : memref<1x4x8x8xbf16, #tpu.memory_space<vmem>>, vector<1x1x8x8xbf16>,
    return
  }
  func.func @transform_0(%arg0: i32, %arg1: i32) -> (i32, i32, i32) {
    %c0_i32 = arith.constant 0 : i32
    %c0_i32_0 = arith.constant 0 : i32
    return %arg0, %arg1, %c0_i32 : i32, i32, i32
  }
  func.func @transform_1(%arg0: i32, %arg1: i32) -> (i32, i32) {
    %c0_i32 = arith.constant 0 : i32
    %c0_i32_0 = arith.constant 0 : i32
    %c0_i32_1 = arith.constant 0 : i32
    return %c0_i32, %c0_i32_0 : i32, i32
  }
  func.func @transform_2(%arg0: i32, %arg1: i32) -> (i32, i32) {
    %c0_i32 = arith.constant 0 : i32
    %c0_i32_0 = arith.constant 0 : i32
    %c0_i32_1 = arith.constant 0 : i32
    return %c0_i32, %c0_i32_0 : i32, i32
  }
  func.func @transform_3(%arg0: i32, %arg1: i32) -> (i32, i32) {
    %c0_i32 = arith.constant 0 : i32
    %c0_i32_0 = arith.constant 0 : i32
    %c0_i32_1 = arith.constant 0 : i32
    return %c0_i32, %c0_i32_0 : i32, i32
  }
  func.func @transform_4(%arg0: i32, %arg1: i32) -> (i32, i32, i32, i32) {
    %c0_i32 = arith.constant 0 : i32
    %c0_i32_0 = arith.constant 0 : i32
    %c0_i32_1 = arith.constant 0 : i32
    return %arg0, %c0_i32, %arg1, %c0_i32_0 : i32, i32, i32, i32
  }
  func.func @transform_5(%arg0: i32, %arg1: i32) -> (i32, i32, i32, i32) {
    %c0_i32 = arith.constant 0 : i32
    %c0_i32_0 = arith.constant 0 : i32
    %c0_i32_1 = arith.constant 0 : i32
    return %arg0, %c0_i32, %arg1, %c0_i32_0 : i32, i32, i32, i32
  }
  func.func @transform_6(%arg0: i32, %arg1: i32) -> (i32, i32, i32, i32) {
    %c0_i32 = arith.constant 0 : i32
    %c0_i32_0 = arith.constant 0 : i32
    %c0_i32_1 = arith.constant 0 : i32
    return %arg0, %c0_i32, %arg1, %c0_i32_0 : i32, i32, i32, i32
  }
}

</mosaic_0001>

<bundles_post_ra>
// kernel: tpu_custom_call.1
= control target key start
LH: loop header
LB: loop body
LE: loop exit
PB: predicated region body
PF: predicated region fallthrough
CT: control target
= control target key end

     0   :  { %s1443_s0 = inlined_call_operand.hbm [shape: f32[2,8,32], index: 0, kind: input, shape index: {}]   ;;  %s1444_s1 = inlined_call_operand.vmem [shape: f32[1,32], index: 1, kind: input, shape index: {}]   ;;  %s1445_s2 = inlined_call_operand.vmem [shape: f32[1,32], index: 2, kind: input, shape index: {}]   ;;  %s1446_s3 = inlined_call_operand.hbm [shape: bf16[32,96], index: 3, kind: input, shape index: {}]   ;;  %s1447_s4 = inlined_call_operand.hbm [shape: bf16[2,4,8,8], index: 4, kind: output, shape index: {0}]   ;;  %s1448_s5 = inlined_call_operand.hbm [shape: bf16[2,4,8,8], index: 5, kind: output, shape index: {1}]   ;;  %s1449_s6 = inlined_call_operand.hbm [shape: bf16[2,4,8,8], index: 6, kind: output, shape index: {2}]  }
   0x1   :  { %1454 = sst [smem:[#allocation15_spill]] %s1446_s3 }
   0x2   :  { %12 = vsyncpa [#allocation3], 0 }
   0x3   :  { %14 = vsyncpa [#allocation3 + $0x1], 0 }
   0x4   :  { %15 = vsyncpa [#allocation6], 0 }
   0x5   :  { %16 = vsyncpa [#allocation4], 0 }
   0x6   :  { %18 = vsyncpa [#allocation4 + $0x1], 0 }
   0x7   :  { %19 = vsyncpa [#allocation9], 0 }
   0x8   :  { %21 = vsyncpa [#allocation9 + $0x1], 0  ;;  %s1110_s21 = smov 0   ;;  %s1112_s22 = smov 0  }
   0x9   :  { %s1114_s23 = smov 0   ;;  %s1116_s24 = smov 0  }
   0xa   :  { %s1118_s25 = smov 0   ;;  %s1120_s26 = smov 0  }
   0xb LB: > { %s1141_s27 = sadd.s32 4294967295, %s1052_s26   ;;  %s1453_s28 = sadd.s32 4294967294, %s1052_s26   ;;  %s1052_s26 = sphi %s1120_s26, %s27_s26   ;;  %s1048_s25 = sphi %s1118_s25, %s1476_s25   ;;  %s1044_s24 = sphi %s1116_s24, %s1475_s24   ;;  %s1040_s23 = sphi %s1114_s23, %s1474_s23   ;;  %s1036_s22 = sphi %s1112_s22, %s1473_s22   ;;  %s1032_s21 = sphi %s1110_s21, %s1472_s21  }
   0xc   : > { %p61_p0 = scmp.ne.s32.totalorder %s1036_s22, %s1032_s21  ;;  %p1450_p1 = scmp.eq.s32.totalorder %s1141_s27, 0 }
   0xd   : > { %p156_p3 = scmp.eq.s32.totalorder %s1453_s28, 1  ;;  %p693_p5 = scmp.ge.s32.totalorder %s1052_s26, 1 }
   0xe   : > { %p1152_p4 = por %p1450_p1, %p61_p0  ;;  %p219_p7 = scmp.lt.s32.totalorder %s1052_s26, 3 }
   0xf   : > { %p1157_p6 = por %p156_p3, %p61_p0  ;;  %s1054_s8 = smov [#allocation5]  }
  0x10   : > { %s1455_s29 = scalar_select %p1152_p4, 1, 0 }
  0x11   : > { %s1456_s30 = scalar_select %p1157_p6, 1, 0 }
  0x12   : > { %p1162_p8 = pnand %p693_p5, %p219_p7  ;;  %s237_s9 = sshll.u32 %s1054_s8, 4  ;;  %s238_s9 = int_to_ptr.vmem [resolvable:$true] %s237_s9 }
  0x13   : > { %s39_s11 = sadd.s32 1, %s1048_s25  ;;  %s1459_s3 = sld [smem:[#allocation15_spill]] }
  0x14   : > { %s1457_s7 = scalar_select %p1162_p8, 1, 0 }
  0x15   : > { %p757_p9 = pneg %p1162_p8 }
  0x17   : > { %p1171_p11 = pnand %p757_p9, %p1450_p1 }
  0x19   : > { %s848_s14 = scalar_lea.hbm %s1459_s3, 256  ;;  %p850_p13 = pneg %p1171_p11 }
  0x1a   : > { %p849_p12 = scmp.ne.s32.totalorder %s1459_s3, %s848_s14  ;;  %p855_p5 = scmp.lt.u32.totalorder %s848_s14, %s1459_s3 }
  0x1c   : > { %p851_p0 = pnand %p850_p13, %p849_p12 }
  0x1e   : > { %p852_p3 = pneg %p851_p0 }
  0x20   : > { %p857_p7 = pnand %p855_p5, %p852_p3 }
  0x22   : > { %860 = shalt.err (!%p857_p7)
}
  0x23   : > { %s861_s19 = scalar_lea.vmem %s238_s9, 256  ;;  %p869_p2 = scmp.lt.s32.totalorder %s238_s9, %s238_s9 }
  0x24   : > { %p862_p9 = scmp.ne.s32.totalorder %s238_s9, %s861_s19  ;;  %p870_p6 = scmp.lt.s32.totalorder %s861_s19, %s861_s19 }
  0x26   : > { %p864_p10 = pnand %p862_p9, %p850_p13  ;;  %p871_p4 = por %p870_p6, %p869_p2 }
  0x28   : > { %p865_p1 = pneg %p864_p10 }
  0x2a   : > { %p872_p8 = pnand %p871_p4, %p865_p1 }
  0x2c   : > { %875 = shalt.err (!%p872_p8)
}
  0x2d   : > { %s1055_s20 = smov 64   ;;  %s1056_s8 = smov 4  }
  0x2e   : > { %760 = dma.hbm_to_vmem [thread:$0]  (!%p1171_p11), %s1459_s3, 256, %s238_s9, [#allocation6], %s1055_s20, %s1055_s20, %s1056_s8  }
  0x2f   : > { %p41_p1 = scmp.ge.s32.totalorder %s39_s11, 2  ;;  %s48_s14 = sadd.s32 1, %s1040_s23 }
  0x30   : > { %p55_p2 = scmp.ne.s32.totalorder %s1040_s23, %s1036_s22  ;;  %p56_p4 = scmp.eq.s32.totalorder %s1052_s26, 0 }
  0x31   : > { %s1478_s11 = smov (%p41_p1, %s39_s11), 0  ;;  %p1461_p8 = scmp.eq.s32.totalorder %s1141_s27, 1 }
  0x32   : > { %p1198_p6 = por %p56_p4, %p55_p2  ;;  %s43_s10 = ssub.s32 %s1048_s25, %s1478_s11 }
  0x33   : > { %p1204_p10 = por %p1461_p8, %p55_p2  ;;  %p776_p12 = scmp.lt.s32.totalorder %s1052_s26, 2 }
  0x34   : > { %p46_p11 = scmp.eq.s32.totalorder %s43_s10, 0  ;;  %s251_s9 = sand.u32 1, %s1040_s23  }
  0x35   : > { %s696_s17 = sshll.u32 %s251_s9, 3  ;;  %s697_s19 = sshll.u32 %s1048_s25, 7 }
  0x36   : > { %s1213_s18 = scalar_select %p46_p11, %s1040_s23, %s48_s14  }
  0x37   : > { %s1219_s12 = scalar_lea.hbm %s1443_s0, %s697_s19  ;;  %s255_s13 = scalar_lea.vmem [#allocation2], %s696_s17 }
  0x38   : > { %s263_s28 = sshll.u32 %s255_s13, 4  ;;  %p1225_p13 = pnand %p776_p12, %p1198_p6  ;;  %s1221_s28 = int_to_ptr.vmem [resolvable:$true] %s263_s28 }
  0x39   : > { %s252_s14 = scalar_lea.sflag [#allocation3], %s251_s9  ;;  %s876_s3 = scalar_lea.hbm %s1219_s12, 128 }
  0x3a   : > { %p877_p0 = scmp.ne.s32.totalorder %s1219_s12, %s876_s3  ;;  %p878_p3 = pneg %p1225_p13 }
  0x3b   : > { %s881_s20 = scalar_lea.hbm %s1443_s0, 256  ;;  %p882_p9 = scmp.lt.u32.totalorder %s1219_s12, %s1443_s0 }
  0x3c   : > { %p879_p5 = pnand %p878_p3, %p877_p0  ;;  %p883_p1 = scmp.lt.u32.totalorder %s881_s20, %s876_s3 }
  0x3d   : > { %p885_p4 = scmp.lt.u32.totalorder %s876_s3, %s1219_s12 }
  0x3e   : > { %p880_p7 = pneg %p879_p5  ;;  %p884_p2 = por %p883_p1, %p882_p9 }
  0x40   : > { %p886_p6 = por %p885_p4, %p884_p2 }
  0x42   : > { %p887_p8 = pnand %p886_p6, %p880_p7 }
  0x44   : > { %890 = shalt.err (!%p887_p8)
}
  0x45   : > { %s891_s9 = scalar_lea.vmem %s1221_s28, 128  ;;  %s1057_s13 = smov [#allocation2]  }
  0x46   : > { %p892_p12 = scmp.ne.s32.totalorder %s1221_s28, %s891_s9  ;;  %s896_s17 = sshll.u32 %s1057_s13, 4  ;;  %s897_s17 = int_to_ptr.vmem [resolvable:$false] %s896_s17 }
  0x47   : > { %s898_s19 = scalar_lea.vmem %s897_s17, 256  ;;  %p899_p5 = scmp.lt.s32.totalorder %s1221_s28, %s897_s17 }
  0x48   : > { %p894_p11 = pnand %p892_p12, %p878_p3  ;;  %p900_p9 = scmp.lt.s32.totalorder %s898_s19, %s891_s9 }
  0x4a   : > { %p895_p0 = pneg %p894_p11  ;;  %p901_p1 = por %p900_p9, %p899_p5 }
  0x4c   : > { %p902_p2 = pnand %p901_p1, %p895_p0 }
  0x4e   : > { %905 = shalt.err (!%p902_p2)
}
  0x4f   : > { %764 = dma.hbm_to_vmem [thread:$0]  (!%p1225_p13), %s1219_s12, 128, %s1221_s28, %s252_s14  }
  0x50   : > { %p1464_p7 = scmp.ne.s32.totalorder %s1457_s7, 0 }
  0x51   : > { %s1257_s3 = sand.u32 (!%p1464_p7), 1, %s1036_s22   ;;  %p1465_p3 = scmp.ne.s32.totalorder (!%p1464_p7), %s1455_s29, 0 }
  0x52   : > { %272 = sbr.rel (%p1464_p7) target bundleno = 810 (0x32a), region = 36  ;;  %s699_s20 = sshll.u32 (!%p1464_p7), %s1257_s3, 3 }
  0x53   : > { %s275_s15 = scalar_lea.sflag (!%p1464_p7), [#allocation3], %s1257_s3  ;;  %s278_s8 = scalar_lea.vmem (!%p1464_p7), [#allocation2], %s699_s20 }
  0x59   : > { %1015 = dma.done.wait (%p1465_p3), %s275_s15, 128  }
  0x5a   : > { %1017 = vsyncadd (%p1465_p3), %s275_s15, 4294967168  ;;  %p1466_p4 = scmp.eq.s32.totalorder %s1141_s27, 0 }
  0x5c   : > { %1019 = dma.done.wait (%p1466_p4), [#allocation6], 256   ;;  %p1467_p13 = pmov %p1466_p4 }
  0x5d   : > { %vm325_vm0 = vcmask 261120   ;;  %v322_v0 = vld [vmem:[%s278_s8] sm:$0xff]  ;;  %v844_v7 = vld [vmem:[#allocation5] sm:$0xff]   ;;  %v1058_v8 = vmov 0.0   ;;  %vm1059_vm1 = vmmov 0   ;;  %v845_v9 = vld [vmem:[#allocation5 + $0x8] sm:$0xff]  }
  0x5e   : > { %1021 = vsyncadd (%p1467_p13), [#allocation6], 4294967040  ;;  %v326_v1 = vsel %vm325_vm0, %v322_v0, 0.0  ;;  %737 = vmatprep.subr.bf16.mxu0 %v1058_v8  ;;  %741 = vmatprep.mubr.msk.bf16.mxu0 %vm1059_vm1, %v1058_v8  ;;  %v704_v14 = vld [vmem:[%s1444_s1] ss:$0 sm:$0xff]  ;;  %s1279_s10 = sshll.u32 %s1257_s3, 4 }
  0x5f   : > { %327 = vadd.xlane.f32.xlu0 %v326_v1  ;;  %738 = vmatpush3.bf16.msra.mxu0 %v844_v7  ;;  %v705_v16 = vld [vmem:[%s1445_s2] ss:$0 sm:$0xff]  ;;  %vm415_vm2 = vcmask 60416   ;;  %s1060_s14 = smov 80   ;;  %s1061_s9 = smov 96  }
  0x60   : > { %739 = vmatprep.subr.bf16.mxu0 %v1058_v8  ;;  %s1282_s13 = scalar_lea.vmem [#allocation7], %s1279_s10  ;;  %s1062_s17 = smov 104  }
  0x61   : > { %s1063_s19 = smov 88   ;;  %s1064_s20 = smov 72  }
  0x62   : > { %s1065_s15 = smov 64   ;;  %s1066_s8 = smov 120  }
  0x63   : > { %740 = vmatpush3.bf16.msra.mxu0 %v845_v9  ;;  %s1067_s28 = smov 56   ;;  %s1068_s29 = smov 112  }
  0x64   : > { %s1069_s7 = smov 48   ;;  %s1070_s12 = smov 40  }
  0xec   : > { %v328_v2 = vpop.xlane.xlu0 %327 }
  0xed   : > { %v330_v3 = vmul.f32 0.03125, %v328_v2 }
  0xef   : > { %v331_v4 = vsub.f32 %v322_v0, %v330_v3 }
  0xf1   : > { %v332_v5 = vmul.f32 %v331_v4, %v331_v4 }
  0xf3   : > { %v333_v6 = vsel %vm325_vm0, %v332_v5, 0.0 }
  0xf4   : > { %334 = vadd.xlane.f32.xlu0 %v333_v6 }
 0x181   : > { %v335_v10 = vpop.xlane.xlu0 %334 }
 0x182   : > { %v336_v11 = vmul.f32 0.03125, %v335_v10 }
 0x184   : > { %v337_v12 = vadd.f32 1e-05, %v336_v11 }
 0x186   : > { %846 = vrsqrt.f32 %v337_v12 }
 0x190   : > { %v847_v13 = vpop.eup %846 }
 0x191   : > { %v339_v15 = vmul.f32 %v847_v13, %v331_v4 }
 0x193   : > { %v346_v17 = vmul.f32 %v704_v14, %v339_v15 }
 0x195   : > { %v353_v18 = vadd.f32 %v705_v16, %v346_v17 }
 0x197   : > { %v354_v19 = vpack.c.bf16 %v353_v18, %v353_v18 }
 0x199   : > { %742 = vmatmul.mubr.msk.bf16.vlgmr.msra.gmra.mrb[0].mxu0 %vm325_vm0, %v354_v19 }
 0x26c   : > { %v408_v20 = vpop.f32.mrb[0].mxu0 }
 0x26d   : > { %v414_v21 = vpack.c.bf16 %v408_v20, %v408_v20  ;;  %v743_v22 = vpop.f32.mrb[1].mxu0 }
 0x26e   : > { %v411_v23 = vpop.f32.mrb[2].mxu0 }
 0x26f   : > { %448 = vrot.lane.b32.xlu0 %v414_v21, %s1060_s14  ;;  %420 = vrot.lane.b32.xlu1 %v414_v21, %s1061_s9  ;;  %v744_v24 = vpop.f32.mrb[3].mxu0  ;;  %416 = vst.msk [vmem:[%s1282_s13] sm:$0xf] %vm415_vm2, %v414_v21  ;;  %s313_s14 = scalar_lea.vmem [#allocation8], %s1279_s10 }
 0x270   : > { %s515_s9 = sshll.u32 %s313_s14, 4  ;;  %s1297_s9 = int_to_ptr.vmem [resolvable:$true] %s515_s9 }
 0x273   : > { %458 = vrot.lane.b32.xlu0 %v414_v21, %s1062_s17  ;;  %433 = vrot.lane.b32.xlu1 %v414_v21, %s1063_s19  ;;  %s478_s17 = sand.u32 1, %s1141_s27   ;;  %s1292_s19 = sshll.u32 %s1044_s24, 8 }
 0x274   : > { %s1306_s24 = scalar_lea.sflag [#allocation9], %s478_s17  ;;  %s906_s27 = scalar_lea.vmem %s1297_s9, 256 }
 0x275   : > { %p907_p6 = scmp.ne.s32.totalorder %s1297_s9, %s906_s27 }
 0x277   : > { %463 = vrot.lane.b32.xlu1 %v414_v21, %s1064_s20  ;;  %p908_p8 = pnand %p907_p6, %p1204_p10 }
 0x279   : > { %p909_p12 = pneg %p908_p8 }
 0x27b   : > { %424 = vrot.lane.b32.xlu1 %v414_v21, %s1065_s15 }
 0x27f   : > { %428 = vrot.lane.b32.xlu1 %v414_v21, %s1066_s8 }
 0x283   : > { %438 = vrot.lane.b32.xlu1 %v414_v21, %s1067_s28  ;;  %s1303_s28 = scalar_lea.hbm %s1448_s5, %s1292_s19 }
 0x287   : > { %443 = vrot.lane.b32.xlu1 %v414_v21, %s1068_s29  ;;  %s1071_s29 = smov [#allocation8]  }
 0x28b   : > { %453 = vrot.lane.b32.xlu1 %v414_v21, %s1069_s7  ;;  %s910_s7 = sshll.u32 %s1071_s29, 4  ;;  %s911_s7 = int_to_ptr.vmem [resolvable:$false] %s910_s7 }
 0x28c   : > { %p913_p11 = scmp.lt.s32.totalorder %s1297_s9, %s911_s7 }
 0x28f   : > { %468 = vrot.lane.b32.xlu1 %v414_v21, %s1070_s12  ;;  %s912_s12 = scalar_lea.vmem %s911_s7, 512 }
 0x290   : > { %p914_p0 = scmp.lt.s32.totalorder %s912_s12, %s906_s27 }
 0x292   : > { %p915_p5 = por %p914_p0, %p913_p11 }
 0x294   : > { %p916_p9 = pnand %p915_p5, %p909_p12 }
 0x2e1   : > { %v449_v25 = vpop.permute.xlu0 %448  ;;  %v421_v26 = vpop.permute.xlu1 %420 }
 0x2e2   : > { %714 = vst.msk [vmem:[%s313_s14 + $0x8] sm:$0xf] %vm415_vm2, %v449_v25  ;;  %423 = vst.msk [vmem:[%s313_s14] sm:$0xf] %vm415_vm2, %v421_v26 }
 0x2e5   : > { %v459_v27 = vpop.permute.xlu0 %458  ;;  %v434_v28 = vpop.permute.xlu1 %433 }
 0x2e6   : > { %716 = vst.msk [vmem:[%s1282_s13 + $0xc] sm:$0xf] %vm415_vm2, %v459_v27  ;;  %711 = vst.msk [vmem:[%s313_s14 + $0x4] sm:$0xf] %vm415_vm2, %v434_v28 }
 0x2e9   : > { %v464_v29 = vpop.permute.xlu1 %463 }
 0x2ea   : > { %717 = vst.msk [vmem:[%s313_s14 + $0xc] sm:$0xf] %vm415_vm2, %v464_v29 }
 0x2eb   : > { %919 = shalt.err (!%p916_p9)
}
 0x2ec   : > { %s920_s14 = scalar_lea.hbm %s1303_s28, 256  ;;  %s924_s8 = scalar_lea.hbm %s1448_s5, 512 }
 0x2ed   : > { %p921_p1 = scmp.ne.s32.totalorder %s1303_s28, %s920_s14  ;;  %p925_p3 = scmp.lt.u32.totalorder %s1303_s28, %s1448_s5 }
 0x2ee   : > { %p926_p4 = scmp.lt.u32.totalorder %s924_s8, %s920_s14  ;;  %p928_p6 = scmp.lt.u32.totalorder %s920_s14, %s1303_s28 }
 0x2ef   : > { %p922_p2 = pnand %p921_p1, %p1204_p10 }
 0x2f0   : > { %p927_p13 = por %p926_p4, %p925_p3 }
 0x2f1   : > { %p923_p7 = pneg %p922_p2 }
 0x2f2   : > { %p929_p8 = por %p928_p6, %p927_p13 }
 0x2f4   : > { %p930_p12 = pnand %p929_p8, %p923_p7 }
 0x2f6   : > { %933 = shalt.err (!%p930_p12)
}
 0x2f7   : > { %s1072_s27 = smov 4   ;;  %v425_v30 = vpop.permute.xlu1 %424  ;;  %s1334_s12 = scalar_lea.vmem [#allocation10], %s1279_s10 }
 0x2f8   : > { %752 = dma.vmem_to_hbm [thread:$0]  (%p1204_p10), %s1297_s9, 256, %s1303_s28, %s1306_s24, %s1065_s15, %s1065_s15, %s1072_s27  }
 0x2f9   : > { %427 = vst.msk [vmem:[%s1334_s12] sm:$0xf] %vm415_vm2, %v425_v30  ;;  %s498_s14 = sshll.u32 %s1282_s13, 4  ;;  %s1349_s10 = scalar_lea.hbm %s1447_s4, %s1292_s19  ;;  %s1343_s14 = int_to_ptr.vmem [resolvable:$true] %s498_s14 }
 0x2fa   : > { %s934_s28 = scalar_lea.vmem %s1343_s14, 256  ;;  %s1073_s8 = smov [#allocation7]  }
 0x2fb   : > { %v429_v31 = vpop.permute.xlu1 %428  ;;  %p935_p11 = scmp.ne.s32.totalorder %s1343_s14, %s934_s28  ;;  %s938_s29 = sshll.u32 %s1073_s8, 4  ;;  %s939_s29 = int_to_ptr.vmem [resolvable:$false] %s938_s29 }
 0x2fc   : > { %710 = vst.msk [vmem:[%s1282_s13 + $0x4] sm:$0xf] %vm415_vm2, %v429_v31  ;;  %s940_s7 = scalar_lea.vmem %s939_s29, 512  ;;  %p941_p9 = scmp.lt.s32.totalorder %s1343_s14, %s939_s29 }
 0x2fd   : > { %p936_p0 = pnand %p935_p11, %p1204_p10  ;;  %p942_p1 = scmp.lt.s32.totalorder %s940_s7, %s934_s28 }
 0x2ff   : > { %v439_v32 = vpop.permute.xlu1 %438  ;;  %p937_p5 = pneg %p936_p0  ;;  %p943_p2 = por %p942_p1, %p941_p9 }
 0x300   : > { %712 = vst.msk [vmem:[%s1334_s12 + $0x4] sm:$0xf] %vm415_vm2, %v439_v32 }
 0x301   : > { %p944_p7 = pnand %p943_p2, %p937_p5 }
 0x303   : > { %v444_v33 = vpop.permute.xlu1 %443 }
 0x304   : > { %713 = vst.msk [vmem:[%s1282_s13 + $0x8] sm:$0xf] %vm415_vm2, %v444_v33 }
 0x305   : > { %947 = shalt.err (!%p944_p7)
}
 0x306   : > { %s948_s13 = scalar_lea.hbm %s1349_s10, 256  ;;  %s952_s8 = scalar_lea.hbm %s1447_s4, 512 }
 0x307   : > { %p949_p3 = scmp.ne.s32.totalorder %s1349_s10, %s948_s13  ;;  %p953_p6 = scmp.lt.u32.totalorder %s1349_s10, %s1447_s4 }
 0x308   : > { %p954_p8 = scmp.lt.u32.totalorder %s952_s8, %s948_s13  ;;  %p956_p11 = scmp.lt.u32.totalorder %s948_s13, %s1349_s10 }
 0x309   : > { %p950_p4 = pnand %p949_p3, %p1204_p10 }
 0x30a   : > { %p955_p12 = por %p954_p8, %p953_p6 }
 0x30b   : > { %p951_p13 = pneg %p950_p4 }
 0x30c   : > { %p957_p0 = por %p956_p11, %p955_p12 }
 0x30e   : > { %p958_p5 = pnand %p957_p0, %p951_p13 }
 0x310   : > { %961 = shalt.err (!%p958_p5)
}
 0x311   : > { %s1468_s28 = scalar_lea.sflag [#allocation4], %s1257_s3  ;;  %s532_s9 = sshll.u32 %s1334_s12, 4  ;;  %v454_v34 = vpop.permute.xlu1 %453  ;;  %s1383_s9 = int_to_ptr.vmem [resolvable:$true] %s532_s9 }
 0x312   : > { %751 = dma.vmem_to_hbm [thread:$0]  (%p1204_p10), %s1343_s14, 256, %s1349_s10, %s1468_s28, %s1065_s15, %s1065_s15, %s1072_s27  }
 0x313   : > { %715 = vst.msk [vmem:[%s1334_s12 + $0x8] sm:$0xf] %vm415_vm2, %v454_v34  ;;  %s1389_s3 = scalar_lea.hbm %s1449_s6, %s1292_s19  ;;  %s962_s17 = scalar_lea.vmem %s1383_s9, 256 }
 0x314   : > { %p963_p9 = scmp.ne.s32.totalorder %s1383_s9, %s962_s17  ;;  %s1074_s14 = smov [#allocation10]  }
 0x315   : > { %v469_v35 = vpop.permute.xlu1 %468  ;;  %s966_s10 = sshll.u32 %s1074_s14, 4  ;;  %s967_s10 = int_to_ptr.vmem [resolvable:$false] %s966_s10 }
 0x316   : > { %718 = vst.msk [vmem:[%s1334_s12 + $0xc] sm:$0xf] %vm415_vm2, %v469_v35  ;;  %p964_p1 = pnand %p963_p9, %p1204_p10  ;;  %s968_s20 = scalar_lea.vmem %s967_s10, 512 }
 0x317   : > { %p969_p7 = scmp.lt.s32.totalorder %s1383_s9, %s967_s10  ;;  %p970_p3 = scmp.lt.s32.totalorder %s968_s20, %s962_s17 }
 0x318   : > { %p965_p2 = pneg %p964_p1 }
 0x319   : > { %p971_p4 = por %p970_p3, %p969_p7 }
 0x31b   : > { %p972_p13 = pnand %p971_p4, %p965_p2 }
 0x31d   : > { %975 = shalt.err (!%p972_p13)
}
 0x31e   : > { %s976_s19 = scalar_lea.hbm %s1389_s3, 256  ;;  %s980_s29 = scalar_lea.hbm %s1449_s6, 512 }
 0x31f   : > { %p977_p6 = scmp.ne.s32.totalorder %s1389_s3, %s976_s19  ;;  %p981_p11 = scmp.lt.u32.totalorder %s1389_s3, %s1449_s6 }
 0x320   : > { %p982_p0 = scmp.lt.u32.totalorder %s980_s29, %s976_s19  ;;  %p984_p9 = scmp.lt.u32.totalorder %s976_s19, %s1389_s3 }
 0x321   : > { %p978_p8 = pnand %p977_p6, %p1204_p10 }
 0x322   : > { %p983_p5 = por %p982_p0, %p981_p11 }
 0x323   : > { %p979_p12 = pneg %p978_p8 }
 0x324   : > { %p985_p1 = por %p984_p9, %p983_p5 }
 0x326   : > { %p986_p2 = pnand %p985_p1, %p979_p12 }
 0x328   : > { %989 = shalt.err (!%p986_p2)
}
 0x329   : > { %753 = dma.vmem_to_hbm [thread:$0]  (%p1204_p10), %s1383_s9, 256, %s1389_s3, %s1306_s24, %s1065_s15, %s1065_s15, %s1072_s27  }
 0x32a PF: > { %s547_s13 = sand.u32 1, %s1032_s21   ;;  %p1469_p7 = scmp.ne.s32.totalorder %s1456_s30, 0 }
 0x32b   : > { %p1470_p3 = scmp.ge.s32.totalorder %s1052_s26, 2  ;;  %s548_s17 = scalar_lea.sflag [#allocation4], %s547_s13 }
 0x32d   : > { %p766_p4 = pnand %p1470_p3, %p1469_p7 }
 0x32f   : > { %1023 = dma.done.wait (!%p766_p4), %s548_s17, 256  }
 0x330   : > { %1025 = vsyncadd (!%p766_p4), %s548_s17, 4294967040  ;;  %s1471_s16 = sadd.s32 4294967294, %s1052_s26  }
 0x331   : > { %s556_s14 = sand.u32 1, %s1471_s16  }
 0x332   : > { %s557_s10 = scalar_lea.sflag [#allocation9], %s556_s14 }
 0x333   : > { %1027 = dma.done.wait (!%p766_p4), %s557_s10, 512  }
 0x334   : > { %1029 = vsyncadd (!%p766_p4), %s557_s10, 4294966784  ;;  %s27_s26 = sadd.s32 1, %s1052_s26   ;;  %s1472_s21 = smov %s1036_s22 }
 0x335   : > { %p24_p10 = scmp.ge.s32.totalorder %s27_s26, 4   ;;  %s1473_s22 = smov %s1040_s23 }
 0x336   : > { %s1474_s23 = smov %s1213_s18  ;;  %s1475_s24 = smov %s1048_s25 }
 0x337   : > { %s1476_s25 = smov %s1478_s11  ;;  %26 = sbr.rel (!%p24_p10) target bundleno = 11 (0xb), region = 126 }
 0x33e   :  { %571 = vsyncpa [#allocation3], 1 }
 0x33f   :  { %573 = vsyncpa [#allocation3 + $0x1], 1 }
 0x340   :  { %574 = vsyncpa [#allocation6], 1 }
 0x341   :  { %575 = vsyncpa [#allocation4], 1 }
 0x342   :  { %577 = vsyncpa [#allocation4 + $0x1], 1 }
 0x343   :  { %578 = vsyncpa [#allocation9], 1 }
 0x344   :  { %580 = vsyncpa [#allocation9 + $0x1], 1 }

</bundles_post_ra>
